<compile_context>
chip_gen: v7x
topology: tpu7x:2x2x1
jax: 0.10.0
libtpu: 0.0.40
codegen_flags: <defaults>
</compile_context>

<pallas_src>
import jax
import jax.numpy as jnp
import numpy as np
from jax import lax
from jax.experimental import pallas as pl
from jax.experimental.pallas import tpu as pltpu


_CHUNK = 512  # lanes processed per inner-loop step (bounds the vreg live set)


def _backbone_update_kernel(x_ref, wT_ref, b_ref, out_ref):
    # x_ref:   (TILE, C_S)  residues on the sublane axis, natural layout
    # wT_ref:  (6, C_S)     resident across the grid (constant index_map)
    # b_ref:   (6, 1)       resident
    # out_ref: (TILE_OUT)   (12, TILE): rows 0..8 = r00..r22, rows 9..11 = t
    tile = x_ref.shape[0]
    chunk = min(_CHUNK, tile)
    n_full = tile // chunk
    rem = tile - n_full * chunk

    wT = wT_ref[...]
    bias = b_ref[...].astype(jnp.float32)

    def do_chunk(start, size):
        xc = x_ref[pl.ds(start, size), :]                      # (size, C_S)
        # (6, C_S) . (size, C_S)^T -> (6, size), f32 accumulate on the MXU.
        y = lax.dot_general(
            wT, xc,
            dimension_numbers=(((1,), (1,)), ((), ())),
            preferred_element_type=jnp.float32,
        ) + bias                                               # (6, size)

        a = y[0:1, :]
        b = y[1:2, :]
        c = y[2:3, :]
        two_a = a + a
        two_b = b + b
        two_c = c + c
        aa2 = two_a * a
        bb2 = two_b * b
        cc2 = two_c * c
        ab2 = two_a * b
        ac2 = two_a * c
        bc2 = two_b * c

        # Unit-quat formula applied to the UNNORMALIZED q = (1, a, b, c),
        # faithfully reproducing the reference forward pass.
        rows = jnp.concatenate(
            [
                1.0 - (bb2 + cc2),   # r00
                ab2 - two_c,         # r01
                ac2 + two_b,         # r02
                ab2 + two_c,         # r10
                1.0 - (aa2 + cc2),   # r11
                bc2 - two_a,         # r12
                ac2 - two_b,         # r20
                bc2 + two_a,         # r21
                1.0 - (aa2 + bb2),   # r22
                y[3:6, :],           # translation (3 rows)
            ],
            axis=0,
        )                                                      # (12, size)
        # One coalesced store (sublane stack on the XLU) instead of 12 masked
        # single-sublane stores.
        out_ref[:, pl.ds(start, size)] = rows.astype(out_ref.dtype)

    if n_full == 1:
        do_chunk(0, chunk)
    elif n_full > 1:
        def body(i, carry):
            do_chunk(pl.multiple_of(i * chunk, chunk), chunk)
            return carry
        lax.fori_loop(0, n_full, body, 0, unroll=2)
    if rem > 0:
        do_chunk(n_full * chunk, rem)


def backbone_update_slab(x, weight, bias, *, tile_n=8192, out_dtype=None):
    """Fused kernel; returns the lane-dense (12, B*R) slab
    (rows 0..8 = r00..r22 row-major, rows 9..11 = translation).
    Consumers that accept this layout avoid an extra HBM transpose pass."""
    B, R, C_S = x.shape
    N = B * R
    if out_dtype is None:
        out_dtype = x.dtype

    x_flat = x.reshape(N, C_S)                          # natural layout, no pad/T
    wT = jnp.asarray(weight).astype(x.dtype).T          # (6, C_S), tiny
    bias2d = jnp.asarray(bias).astype(jnp.float32).reshape(6, 1)

    # ---- residue-tile selection -------------------------------------------
    tile_n = max(128, (int(tile_n) // 128) * 128)       # lane-aligned cap
    x_isz = jnp.dtype(x.dtype).itemsize
    o_isz = jnp.dtype(out_dtype).itemsize
    bytes_per_res = C_S * x_isz + 12 * o_isz
    vmem_budget = 10 * 1024 * 1024                      # double-buffered in+out
    tile_cap = max(128, ((vmem_budget // (2 * bytes_per_res)) // 128) * 128)

    if N <= 128:
        tile = N                                        # single full-extent block
    else:
        max_aligned = (N // 128) * 128                  # lane-aligned tiles only
        half = pl.cdiv(pl.cdiv(N, 2), 128) * 128        # aim for >= 2 grid steps
        tile = min(tile_n, tile_cap, max(512, half), max_aligned)
    grid_n = pl.cdiv(N, tile)                           # ragged tail handled by Pallas

    out = pl.pallas_call(
        _backbone_update_kernel,
        out_shape=jax.ShapeDtypeStruct((12, N), out_dtype),
        grid_spec=pltpu.PrefetchScalarGridSpec(
            num_scalar_prefetch=0,
            grid=(grid_n,),
            in_specs=[
                pl.BlockSpec((tile, C_S), lambda i: (i, 0)),
                pl.BlockSpec((6, C_S), lambda i: (0, 0)),
                pl.BlockSpec((6, 1), lambda i: (0, 0)),
            ],
            out_specs=pl.BlockSpec((12, tile), lambda i: (0, i)),
        ),
        compiler_params=pltpu.CompilerParams(
            dimension_semantics=("parallel",),
            vmem_limit_bytes=32 * 1024 * 1024,
        ),
    )(x_flat, wT, bias2d)
    return out


def backbone_update(x, weight, bias, *, tile_n=8192, out_dtype=None):
    """x: (B, R, C_S), weight: (C_S, 6), bias: (6,)
       -> (rot (B, R, 3, 3), t (B, R, 3)), matching the PyTorch module."""
    B, R, _ = x.shape
    slab = backbone_update_slab(x, weight, bias, tile_n=tile_n, out_dtype=out_dtype)
    rot = slab[:9].T.reshape(B, R, 3, 3)
    t = slab[9:12].T.reshape(B, R, 3)
    return rot, t


def _reference(x, weight, bias):
    """Plain-JAX reference mirroring the PyTorch forward (f32)."""
    y = jnp.einsum("brc,cd->brd", x.astype(jnp.float32),
                   jnp.asarray(weight).astype(jnp.float32)) \
        + jnp.asarray(bias).astype(jnp.float32)
    t = y[..., 3:6]
    a, b, c = y[..., 0], y[..., 1], y[..., 2]
    aa, bb, cc = a * a, b * b, c * c
    ab, ac, bc = a * b, a * c, b * c
    rot = jnp.stack(
        [
            1.0 - 2.0 * (bb + cc), 2.0 * (ab - c), 2.0 * (ac + b),
            2.0 * (ab + c), 1.0 - 2.0 * (aa + cc), 2.0 * (bc - a),
            2.0 * (ac - b), 2.0 * (bc + a), 1.0 - 2.0 * (aa + bb),
        ],
        axis=-1,
    ).reshape(x.shape[0], x.shape[1], 3, 3)
    return rot, t


if __name__ == "__main__":
    key = jax.random.PRNGKey(0)

    def run_case(B, R, C_S):
        kx, kw, kb = jax.random.split(jax.random.fold_in(key, B * 100003 + R), 3)
        x = jax.random.normal(kx, (B, R, C_S), dtype=jnp.float32)
        bound = 1.0 / np.sqrt(C_S)  # nn.Linear(C_S, 6)-style init
        weight = jax.random.uniform(kw, (C_S, 6), jnp.float32, -bound, bound)
        bias = jax.random.uniform(kb, (6,), jnp.float32, -bound, bound)

        rot, t = backbone_update(x, weight, bias)
        rot, t = jax.block_until_ready((rot, t))

        rot_ref, t_ref = _reference(x, weight, bias)
        np.testing.assert_allclose(np.asarray(rot), np.asarray(rot_ref),
                                   rtol=1e-5, atol=1e-5)
        np.testing.assert_allclose(np.asarray(t), np.asarray(t_ref),
                                   rtol=1e-5, atol=1e-5)
        assert rot.shape == (B, R, 3, 3) and t.shape == (B, R, 3)

    # Small shape from the module spec (single full-extent block path).
    run_case(B=2, R=16, C_S=32)
    # Multi-step grid + in-kernel chunk loop (fori_loop) path.
    run_case(B=2, R=1024, C_S=32)
    # Ragged final grid block path (N not a multiple of the tile).
    run_case(B=3, R=300, C_S=32)

    print("KERNEL_OK")
</pallas_src>

<mosaic_0001>
module attributes {stable_mosaic.version = 11 : i64} {
  func.func @_backbone_update_kernel(%arg0: i32, %arg1: memref<32x32xf32, #tpu.memory_space<vmem>>, %arg2: memref<6x32xf32, #tpu.memory_space<vmem>>, %arg3: memref<6x1xf32, #tpu.memory_space<vmem>>, %arg4: memref<12x32xf32, #tpu.memory_space<vmem>>) attributes {dimension_semantics = [#tpu.dimension_semantics<parallel>], iteration_bounds = array<i64: 1>, scalar_prefetch = 0 : i64, scratch_operands = 0 : i64, tpu.core_type = #tpu.core_type<tc>, window_params = [{transform_indices = @transform_0, window_bounds = array<i64: 32, 32>}, {pipeline_mode = #tpu.pipeline_mode<synchronous>, transform_indices = @transform_1, window_bounds = array<i64: 6, 32>}, {pipeline_mode = #tpu.pipeline_mode<synchronous>, transform_indices = @transform_2, window_bounds = array<i64: 6, 1>}, {transform_indices = @transform_3, window_bounds = array<i64: 12, 32>}]} {
    %c0 = arith.constant 0 : index
    %c0_0 = arith.constant 0 : index
    %0 = vector.load %arg2[%c0, %c0_0] : memref<6x32xf32, #tpu.memory_space<vmem>>, vector<6x32xf32>
    %c0_1 = arith.constant 0 : index
    %c0_2 = arith.constant 0 : index
    %1 = vector.load %arg3[%c0_1, %c0_2] : memref<6x1xf32, #tpu.memory_space<vmem>>, vector<6x1xf32>
    %c0_3 = arith.constant 0 : index
    %c0_4 = arith.constant 0 : index
    %2 = vector.load %arg1[%c0_3, %c0_4] : memref<32x32xf32, #tpu.memory_space<vmem>>, vector<32x32xf32>
    %cst = arith.constant dense<0.000000e+00> : vector<6x32xf32>
    %3 = tpu.matmul %0, %2, %cst {dimension_numbers = #tpu.dot_dimension_numbers<[1], [1], [0], [0], [0, 0, 1, 0], [], []>} : vector<6x32xf32>, vector<32x32xf32>, vector<6x32xf32> -> vector<6x32xf32>
    %4 = vector.broadcast %1 : vector<6x1xf32> to vector<6x32xf32>
    %5 = arith.addf %3, %4 : vector<6x32xf32>
    %6 = vector.extract_strided_slice %5 {offsets = [0, 0], sizes = [1, 32], strides = [1, 1]} : vector<6x32xf32> to vector<1x32xf32>
    %7 = vector.extract_strided_slice %5 {offsets = [1, 0], sizes = [1, 32], strides = [1, 1]} : vector<6x32xf32> to vector<1x32xf32>
    %8 = vector.extract_strided_slice %5 {offsets = [2, 0], sizes = [1, 32], strides = [1, 1]} : vector<6x32xf32> to vector<1x32xf32>
    %9 = arith.addf %6, %6 : vector<1x32xf32>
    %10 = arith.addf %7, %7 : vector<1x32xf32>
    %11 = arith.addf %8, %8 : vector<1x32xf32>
    %12 = arith.mulf %9, %6 : vector<1x32xf32>
    %13 = arith.mulf %10, %7 : vector<1x32xf32>
    %14 = arith.mulf %11, %8 : vector<1x32xf32>
    %15 = arith.mulf %9, %7 : vector<1x32xf32>
    %16 = arith.mulf %9, %8 : vector<1x32xf32>
    %17 = arith.mulf %10, %8 : vector<1x32xf32>
    %18 = arith.addf %13, %14 : vector<1x32xf32>
    %cst_5 = arith.constant 1.000000e+00 : f32
    %19 = vector.broadcast %cst_5 : f32 to vector<1x32xf32>
    %20 = arith.subf %19, %18 : vector<1x32xf32>
    %21 = arith.subf %15, %11 : vector<1x32xf32>
    %22 = arith.addf %16, %10 : vector<1x32xf32>
    %23 = arith.addf %15, %11 : vector<1x32xf32>
    %24 = arith.addf %12, %14 : vector<1x32xf32>
    %cst_6 = arith.constant 1.000000e+00 : f32
    %25 = vector.broadcast %cst_6 : f32 to vector<1x32xf32>
    %26 = arith.subf %25, %24 : vector<1x32xf32>
    %27 = arith.subf %17, %9 : vector<1x32xf32>
    %28 = arith.subf %16, %10 : vector<1x32xf32>
    %29 = arith.addf %17, %9 : vector<1x32xf32>
    %30 = arith.addf %12, %13 : vector<1x32xf32>
    %cst_7 = arith.constant 1.000000e+00 : f32
    %31 = vector.broadcast %cst_7 : f32 to vector<1x32xf32>
    %32 = arith.subf %31, %30 : vector<1x32xf32>
    %33 = vector.extract_strided_slice %5 {offsets = [3, 0], sizes = [3, 32], strides = [1, 1]} : vector<6x32xf32> to vector<3x32xf32>
    %34 = tpu.concatenate %20, %21, %22, %23, %26, %27, %28, %29, %32, %33 in 0 : vector<1x32xf32>, vector<1x32xf32>, vector<1x32xf32>, vector<1x32xf32>, vector<1x32xf32>, vector<1x32xf32>, vector<1x32xf32>, vector<1x32xf32>, vector<1x32xf32>, vector<3x32xf32> -> vector<12x32xf32>
    %c0_8 = arith.constant 0 : index
    %c0_9 = arith.constant 0 : index
    %35 = vector.load %arg4[%c0_8, %c0_9] : memref<12x32xf32, #tpu.memory_space<vmem>>, vector<12x32xf32>
    tpu.vector_store %arg4[%c0_8, %c0_9], %34 {strides = array<i32>} : memref<12x32xf32, #tpu.memory_space<vmem>>, vector<12x32xf32>,
    return
  }
  func.func @transform_0(%arg0: i32) -> (i32, i32) {
    %c0_i32 = arith.constant 0 : i32
    %c0_i32_0 = arith.constant 0 : i32
    return %arg0, %c0_i32 : i32, i32
  }
  func.func @transform_1(%arg0: i32) -> (i32, i32) {
    %c0_i32 = arith.constant 0 : i32
    %c0_i32_0 = arith.constant 0 : i32
    %c0_i32_1 = arith.constant 0 : i32
    return %c0_i32, %c0_i32_0 : i32, i32
  }
  func.func @transform_2(%arg0: i32) -> (i32, i32) {
    %c0_i32 = arith.constant 0 : i32
    %c0_i32_0 = arith.constant 0 : i32
    %c0_i32_1 = arith.constant 0 : i32
    return %c0_i32, %c0_i32_0 : i32, i32
  }
  func.func @transform_3(%arg0: i32) -> (i32, i32) {
    %c0_i32 = arith.constant 0 : i32
    %c0_i32_0 = arith.constant 0 : i32
    return %c0_i32, %arg0 : i32, i32
  }
}

</mosaic_0001>

<bundles_post_ra>
// kernel: tpu_custom_call.1
= control target key start
LH: loop header
LB: loop body
LE: loop exit
PB: predicated region body
PF: predicated region fallthrough
CT: control target
= control target key end

     0   :  { %8 = vsyncpa [#allocation3], 0  ;;  %s372_s0 = inlined_call_operand.hbm [shape: f32[32,32], index: 0, kind: input, shape index: {}]   ;;  %s373_s1 = inlined_call_operand.vmem [shape: f32[6,32], index: 1, kind: input, shape index: {}]   ;;  %s374_s2 = inlined_call_operand.vmem [shape: f32[6,1], index: 2, kind: input, shape index: {}]   ;;  %s375_s3 = inlined_call_operand.hbm [shape: f32[12,32], index: 3, kind: output, shape index: {}]  }
   0x1   :  { %9 = vsyncpa [#allocation4], 0  ;;  %s302_s12 = smov [#allocation2]   ;;  %s254_s16 = scalar_lea.hbm %s372_s0, 512 }
   0x2   :  { %s15_s13 = sshll.u32 %s302_s12, 4  ;;  %p255_p0 = scmp.ne.s32.totalorder %s372_s0, %s254_s16  ;;  %s16_s13 = int_to_ptr.vmem [resolvable:$true] %s15_s13 }
   0x3   :  { %p258_p1 = scmp.lt.u32.totalorder %s254_s16, %s372_s0 }
   0x5   :  { %p260_p2 = pnand %p258_p1, %p255_p0 }
   0x7   :  { %263 = shalt.err (!%p260_p2)
}
   0x8   :  { %s264_s21 = scalar_lea.vmem %s16_s13, 512  ;;  %p269_p4 = scmp.lt.s32.totalorder %s16_s13, %s16_s13 }
   0x9   :  { %p265_p3 = scmp.ne.s32.totalorder %s16_s13, %s264_s21  ;;  %p270_p5 = scmp.lt.s32.totalorder %s264_s21, %s264_s21 }
   0xb   :  { %p271_p6 = por %p270_p5, %p269_p4 }
   0xd   :  { %p272_p7 = pnand %p271_p6, %p265_p3 }
   0xf   :  { %275 = shalt.err (!%p272_p7)
}
  0x10   :  { %s303_s22 = smov 128   ;;  %s304_s23 = smov 8  }
  0x11   :  { %21 = dma.hbm_to_vmem [thread:$0]  %s372_s0, 512, %s16_s13, [#allocation3], %s303_s22, %s303_s22, %s304_s23  }
  0x12   :  { %298 = dma.done.wait [#allocation3], 512  }
  0x13   :  { %299 = vsyncadd [#allocation3], 4294966784  ;;  %v305_v0 = vmov 0.0|0.0   ;;  %vm306_vm0 = vmmov 0   ;;  %v307_v1 = vmov 0.0   ;;  %v308_v2 = vmov 0  }
  0x14   :  { %237 = vmatprep.subr.bf16.mxu0 %v305_v0  ;;  %234 = vmatprep.mubr.msk.f32.mxu0 %vm306_vm0, %v307_v1  ;;  %vm40_vm1 = vcmask 261120   ;;  %v31_v3 = vld [vmem:[#allocation2] sm:$0xff]  ;;  %v32_v4 = vld [vmem:[#allocation2 + $0x8] sm:$0xff]  ;;  %v33_v7 = vld [vmem:[#allocation2 + $0x10] sm:$0xff]  ;;  %vm181_vm3 = vcmask 1040384   ;;  %vm197_vm4 = vcmask 257024  }
  0x15   :  { %253 = vset.pattern.permute.xlu0 %v308_v2  ;;  %vm239_vm2 = vmpackc.low %vm40_vm1, %vm40_vm1  ;;  %v238_v5 = vpack.c.bf16 %v32_v4, %v31_v3  ;;  %v30_v6 = vld [vmem:[%s374_s2] sm:$0x3f]  ;;  %v34_v8 = vld [vmem:[#allocation2 + $0x18] sm:$0xff]  ;;  %vm183_vm5 = vcmask 1041408   ;;  %vm185_vm6 = vcmask 1042432   ;;  %vm187_vm7 = vcmask 1043456  }
  0x16   :  { %37 = vperm.xlu0 %253, %v30_v6   ;;  %v242_v9 = vpack.c.bf16 %v34_v8, %v33_v7  ;;  %v29_v10 = vld [vmem:[%s373_s1] sm:$0x3f]  ;;  %vm189_vm8 = vcmask 1044480   ;;  %vm191_vm9 = vcmask 1045504   ;;  %s309_s1 = smov [#allocation5]   ;;  %vm193_vm10 = vcmask 1046528  }
  0x17   :  { %240 = vmatpush3.bf16.xpose.msk.msra.mxu0 %vm239_vm2, %v238_v5  ;;  %s204_s2 = sshll.u32 %s309_s1, 4  ;;  %s205_s2 = int_to_ptr.vmem [resolvable:$true] %s204_s2 }
  0x18   :  { %241 = vmatprep.subr.bf16.mxu0 %v305_v0  ;;  %s276_s29 = scalar_lea.vmem %s205_s2, 256  ;;  %p281_p9 = scmp.lt.s32.totalorder %s205_s2, %s205_s2 }
  0x19   :  { %p277_p8 = scmp.ne.s32.totalorder %s205_s2, %s276_s29  ;;  %p282_p10 = scmp.lt.s32.totalorder %s276_s29, %s276_s29 }
  0x1b   :  { %p283_p11 = por %p282_p10, %p281_p9 }
  0x1d   :  { %p284_p12 = pnand %p283_p11, %p277_p8 }
  0x1f   :  { %244 = vmatpush3.bf16.xpose.msk.msra.mxu0 %vm239_vm2, %v242_v9 }
  0x26   :  { %235 = vmatmul.mubr.msk.f32.vlgmr.msra.gmra.mrb[0].mxu0 %vm40_vm1, %v29_v10 }
  0x95   :  { %v38_v11 = vpop.permute.xlu0 %37 }
  0xf9   :  { %v122_v12 = vpop.f32.mrb[0].mxu0 }
  0xfa   :  { %v123_v13 = vadd.f32 %v122_v12, %v38_v11  ;;  %v236_v14 = vpop.f32.mrb[1].mxu0 }
  0xfc   :  { %v126_v15 = vadd.f32 %v123_v13, %v123_v13  ;;  %v129_v16 = vrot.slane %v123_v13, 1  ;;  %v132_v17 = vrot.slane %v123_v13, 2 }
  0xfe   :  { %v127_v18 = vmul.f32 %v126_v15, %v123_v13  ;;  %v131_v19 = vmul.f32 %v129_v16, %v126_v15  ;;  %v134_v20 = vmul.f32 %v132_v17, %v126_v15  ;;  %v144_v21 = vrot.slane %v126_v15, 1 }
  0xff   :  { %v141_v22 = vrot.slane %v126_v15, 2  ;;  %v152_v28 = vrot.slane %v126_v15, 7 }
 0x100   :  { %v148_v23 = vrot.slane %v127_v18, 2  ;;  %v136_v24 = vrot.slane %v127_v18, 1  ;;  %v146_v29 = vadd.f32 %v144_v21, %v134_v20  ;;  %v155_v37 = vsub.f32 %v134_v20, %v144_v21 }
 0x101   :  { %v143_v27 = vsub.f32 %v131_v19, %v141_v22  ;;  %v147_v31 = vadd.f32 %v141_v22, %v131_v19  ;;  %v154_v33 = vsub.f32 %v131_v19, %v152_v28  ;;  %v156_v39 = vadd.f32 %v152_v28, %v131_v19 }
 0x102   :  { %v150_v25 = vadd.f32 %v148_v23, %v127_v18  ;;  %v138_v26 = vadd.f32 %v136_v24, %v127_v18  ;;  %v164_v38 = vrot.slane %v146_v29, 6  ;;  %v176_v46 = vrot.slane %v155_v37, 2 }
 0x103   :  { %v161_v35 = vrot.slane %v143_v27, 7  ;;  %v167_v40 = vrot.slane %v147_v31, 5  ;;  %v173_v44 = vrot.slane %v154_v33, 4  ;;  %v179_v48 = vrot.slane %v156_v39, 2 }
 0x104   :  { %v139_v30 = vsub.f32 1.0, %v138_v26  ;;  %v151_v32 = vsub.f32 1.0, %v150_v25 }
 0x106   :  { %v158_v34 = vrot.slane %v139_v30, 1  ;;  %v195_v36 = vsel %vm181_vm3, %v139_v30, %v132_v17  ;;  %v170_v42 = vrot.slane %v151_v32, 4 }
 0x107   :  { %198 = vst.msk [vmem:[#allocation5 + $0x8] sm:$0xf] %vm197_vm4, %v195_v36 }
 0x108   :  { %v182_v41 = vsel %vm181_vm3, %v158_v34, %v161_v35 }
 0x109   :  { %v184_v43 = vsel %vm183_vm5, %v182_v41, %v164_v38 }
 0x10a   :  { %v186_v45 = vsel %vm185_vm6, %v184_v43, %v167_v40 }
 0x10b   :  { %v188_v47 = vsel %vm187_vm7, %v186_v45, %v170_v42 }
 0x10c   :  { %v190_v49 = vsel %vm189_vm8, %v188_v47, %v173_v44 }
 0x10d   :  { %v192_v50 = vsel %vm191_vm9, %v190_v49, %v176_v46 }
 0x10e   :  { %v194_v51 = vsel %vm193_vm10, %v192_v50, %v179_v48 }
 0x10f   :  { %196 = vst.msk [vmem:[#allocation5] sm:$0xff] %vm40_vm1, %v194_v51 }
 0x110   :  { %287 = shalt.err (!%p284_p12)
}
 0x111   :  { %s288_s5 = scalar_lea.hbm %s375_s3, 256 }
 0x112   :  { %p289_p13 = scmp.ne.s32.totalorder %s375_s3, %s288_s5  ;;  %p292_p0 = scmp.lt.u32.totalorder %s288_s5, %s375_s3 }
 0x114   :  { %p294_p1 = pnand %p292_p0, %p289_p13 }
 0x116   :  { %297 = shalt.err (!%p294_p1)
}
 0x117   :  { %210 = dma.vmem_to_hbm [thread:$0]  %s205_s2, 256, %s375_s3, [#allocation4], %s303_s22, %s303_s22, %s304_s23  }
 0x118   :  { %300 = dma.done.wait [#allocation4], 256  }
 0x119   :  { %301 = vsyncadd [#allocation4], 4294967040 }
 0x11a   :  { %214 = vsyncpa [#allocation3], 1 }
 0x11b   :  { %215 = vsyncpa [#allocation4], 1 }

</bundles_post_ra>
